<compile_context>
chip_gen: v7x
topology: tpu7x:2x2x1
jax: 0.10.0
libtpu: 0.0.40
codegen_flags: <defaults>
</compile_context>

<pallas_src>
import jax
import jax.numpy as jnp
from jax.experimental import pallas as pl
from jax.experimental.pallas import tpu as pltpu

LANES = 128
SUBLANES = 8
MAX_TILE_ROWS = 2048   # 1 MiB f32 per input block; safe on v5e/v6e/v7x


def _dice_partial_kernel(pred_ref, targ_ref, num_ref, den_ref):
    i = pl.program_id(1)   # streaming / reduction axis

    @pl.when(i == 0)
    def _():
        num_ref[...] = jnp.zeros_like(num_ref)
        den_ref[...] = jnp.zeros_like(den_ref)

    p = pred_ref[...].astype(jnp.float32)
    t = targ_ref[...].astype(jnp.float32)

    # Vreg-shaped partial accumulation: reduce the tile to (8,128) with pure
    # VPU adds (the reshape splits whole (8,128) tiles, so it is layout
    # preserving); the expensive cross-lane/sublane reduce happens once, in
    # the wrapper epilogue.
    num_ref[...] += jnp.sum((p * t).reshape(-1, SUBLANES, LANES), axis=0)
    den_ref[...] += jnp.sum((p + t).reshape(-1, SUBLANES, LANES), axis=0)


def _choose_tile_rows(rows: int, max_rows: int = MAX_TILE_ROWS) -> int:
    """Largest multiple of SUBLANES that divides `rows` and is <= max_rows."""
    cap = min(rows, max_rows)
    cap -= cap % SUBLANES
    for cand in range(cap, SUBLANES - 1, -SUBLANES):
        if rows % cand == 0:
            return cand
    return SUBLANES


def dice_loss(pred, target):
    assert pred.shape == target.shape, "pred/target shape mismatch"

    n = pred.size
    p_flat = pred.reshape(-1)      # keep native dtype; widen in-kernel
    t_flat = target.reshape(-1)

    # Align to a (rows, 128) slab with rows a multiple of 8. Zero padding
    # contributes 0 to both sums; aligned sizes need no copy.
    align = SUBLANES * LANES
    n_pad = ((n + align - 1) // align) * align
    if n_pad != n:
        p_flat = jnp.pad(p_flat, (0, n_pad - n))
        t_flat = jnp.pad(t_flat, (0, n_pad - n))

    rows = n_pad // LANES
    p2 = p_flat.reshape(rows, LANES)
    t2 = t_flat.reshape(rows, LANES)

    tile_rows = _choose_tile_rows(rows)
    num_blocks = rows // tile_rows

    # Shard the streaming reduction across 2 cores when it splits evenly
    # (uses both TensorCores on v7x; harmless on single-core chips).
    num_shards = 2 if (num_blocks % 2 == 0 and num_blocks >= 2) else 1
    blocks_per_shard = num_blocks // num_shards

    in_map = lambda s, i: (s * blocks_per_shard + i, 0)
    out_map = lambda s, i: (s, 0, 0)

    num_parts, den_parts = pl.pallas_call(
        _dice_partial_kernel,
        out_shape=(
            jax.ShapeDtypeStruct((num_shards, SUBLANES, LANES), jnp.float32),
            jax.ShapeDtypeStruct((num_shards, SUBLANES, LANES), jnp.float32),
        ),
        grid_spec=pltpu.PrefetchScalarGridSpec(
            num_scalar_prefetch=0,
            grid=(num_shards, blocks_per_shard),
            in_specs=[
                pl.BlockSpec((tile_rows, LANES), in_map),
                pl.BlockSpec((tile_rows, LANES), in_map),
            ],
            out_specs=(
                pl.BlockSpec((None, SUBLANES, LANES), out_map),
                pl.BlockSpec((None, SUBLANES, LANES), out_map),
            ),
        ),
        compiler_params=pltpu.CompilerParams(
            dimension_semantics=("parallel", "arbitrary")),
    )(p2, t2)

    numerator = 2.0 * jnp.sum(num_parts)
    denominator = jnp.sum(den_parts)
    return 1.0 - (numerator + 1.0) / (denominator + 1.0)


def dice_ref(pred, target):
    numerator = 2.0 * jnp.sum(pred * target)
    denominator = jnp.sum(pred + target)
    return 1.0 - (numerator + 1.0) / (denominator + 1.0)


if __name__ == "__main__":
    key = jax.random.PRNGKey(0)
    kp, kt = jax.random.split(key)

    # Primary small case: segmentation-style (N, C, H, W).
    pred = jax.nn.sigmoid(jax.random.normal(kp, (2, 4, 16, 16), jnp.float32))
    target = (jax.random.uniform(kt, (2, 4, 16, 16)) > 0.5).astype(jnp.float32)

    out = jax.block_until_ready(dice_loss(pred, target))
    ref = jax.block_until_ready(dice_ref(pred, target))
    assert jnp.allclose(out, ref, rtol=1e-5, atol=1e-5), (out, ref)

    # Extra sanity checks: (a) non-aligned size exercising the pad path,
    # (b) multi-block size exercising big tiles + the 2-shard split.
    for shape, rtol in (((3, 5, 7, 11), 1e-5), ((8, 8, 64, 128), 1e-4)):
        kp2, kt2 = jax.random.split(jax.random.fold_in(key, shape[0]))
        p = jax.nn.sigmoid(jax.random.normal(kp2, shape, jnp.float32))
        t = (jax.random.uniform(kt2, shape) > 0.5).astype(jnp.float32)
        o = jax.block_until_ready(dice_loss(p, t))
        r = jax.block_until_ready(dice_ref(p, t))
        assert jnp.allclose(o, r, rtol=rtol, atol=1e-5), (shape, o, r)

    print("KERNEL_OK")
</pallas_src>

<mosaic_0001>
module attributes {stable_mosaic.version = 11 : i64} {
  func.func @_dice_partial_kernel(%arg0: i32, %arg1: i32, %arg2: memref<16x128xf32, #tpu.memory_space<vmem>>, %arg3: memref<16x128xf32, #tpu.memory_space<vmem>>, %arg4: memref<1x8x128xf32, #tpu.memory_space<vmem>>, %arg5: memref<1x8x128xf32, #tpu.memory_space<vmem>>) attributes {dimension_semantics = [#tpu.dimension_semantics<parallel>, #tpu.dimension_semantics<arbitrary>], iteration_bounds = array<i64: 1, 1>, scalar_prefetch = 0 : i64, scratch_operands = 0 : i64, tpu.core_type = #tpu.core_type<tc>, window_params = [{transform_indices = @transform_0, window_bounds = array<i64: 16, 128>}, {transform_indices = @transform_1, window_bounds = array<i64: 16, 128>}, {transform_indices = @transform_2, window_bounds = array<i64: 1, 8, 128>}, {transform_indices = @transform_3, window_bounds = array<i64: 1, 8, 128>}]} {
    %c0_i32 = arith.constant 0 : i32
    %0 = arith.cmpi eq, %arg1, %c0_i32 : i32
    %1 = arith.extui %0 : i1 to i32
    %c0_i32_0 = arith.constant 0 : i32
    %2 = arith.cmpi ne, %1, %c0_i32_0 : i32
    scf.if %2 {
      %cst_17 = arith.constant 0.000000e+00 : f32
      %23 = vector.broadcast %cst_17 : f32 to vector<8x128xf32>
      %c0_18 = arith.constant 0 : index
      %c0_19 = arith.constant 0 : index
      %c0_20 = arith.constant 0 : index
      %24 = vector.load %arg4[%c0_18, %c0_19, %c0_20] : memref<1x8x128xf32, #tpu.memory_space<vmem>>, vector<1x8x128xf32>
      %25 = vector.shape_cast %24 : vector<1x8x128xf32> to vector<8x128xf32>
      %26 = vector.shape_cast %23 : vector<8x128xf32> to vector<1x8x128xf32>
      tpu.vector_store %arg4[%c0_18, %c0_19, %c0_20], %26 {strides = array<i32>} : memref<1x8x128xf32, #tpu.memory_space<vmem>>, vector<1x8x128xf32>,
      %cst_21 = arith.constant 0.000000e+00 : f32
      %27 = vector.broadcast %cst_21 : f32 to vector<8x128xf32>
      %c0_22 = arith.constant 0 : index
      %c0_23 = arith.constant 0 : index
      %c0_24 = arith.constant 0 : index
      %28 = vector.load %arg5[%c0_22, %c0_23, %c0_24] : memref<1x8x128xf32, #tpu.memory_space<vmem>>, vector<1x8x128xf32>
      %29 = vector.shape_cast %28 : vector<1x8x128xf32> to vector<8x128xf32>
      %30 = vector.shape_cast %27 : vector<8x128xf32> to vector<1x8x128xf32>
      tpu.vector_store %arg5[%c0_22, %c0_23, %c0_24], %30 {strides = array<i32>} : memref<1x8x128xf32, #tpu.memory_space<vmem>>, vector<1x8x128xf32>,
    } else {
    }
    %c0 = arith.constant 0 : index
    %c0_1 = arith.constant 0 : index
    %3 = vector.load %arg2[%c0, %c0_1] : memref<16x128xf32, #tpu.memory_space<vmem>>, vector<16x128xf32>
    %c0_2 = arith.constant 0 : index
    %c0_3 = arith.constant 0 : index
    %4 = vector.load %arg3[%c0_2, %c0_3] : memref<16x128xf32, #tpu.memory_space<vmem>>, vector<16x128xf32>
    %c0_4 = arith.constant 0 : index
    %c0_5 = arith.constant 0 : index
    %c0_6 = arith.constant 0 : index
    %5 = vector.load %arg4[%c0_4, %c0_5, %c0_6] : memref<1x8x128xf32, #tpu.memory_space<vmem>>, vector<1x8x128xf32>
    %6 = vector.shape_cast %5 : vector<1x8x128xf32> to vector<8x128xf32>
    %7 = arith.mulf %3, %4 : vector<16x128xf32>
    %8 = vector.shape_cast %7 : vector<16x128xf32> to vector<2x8x128xf32>
    %cst = arith.constant dense<0.000000e+00> : vector<8x128xf32>
    %9 = vector.multi_reduction <add>, %8, %cst [0] : vector<2x8x128xf32> to vector<8x128xf32>
    %10 = arith.addf %6, %9 : vector<8x128xf32>
    %c0_7 = arith.constant 0 : index
    %c0_8 = arith.constant 0 : index
    %c0_9 = arith.constant 0 : index
    %11 = vector.load %arg4[%c0_7, %c0_8, %c0_9] : memref<1x8x128xf32, #tpu.memory_space<vmem>>, vector<1x8x128xf32>
    %12 = vector.shape_cast %11 : vector<1x8x128xf32> to vector<8x128xf32>
    %13 = vector.shape_cast %10 : vector<8x128xf32> to vector<1x8x128xf32>
    tpu.vector_store %arg4[%c0_7, %c0_8, %c0_9], %13 {strides = array<i32>} : memref<1x8x128xf32, #tpu.memory_space<vmem>>, vector<1x8x128xf32>,
    %c0_10 = arith.constant 0 : index
    %c0_11 = arith.constant 0 : index
    %c0_12 = arith.constant 0 : index
    %14 = vector.load %arg5[%c0_10, %c0_11, %c0_12] : memref<1x8x128xf32, #tpu.memory_space<vmem>>, vector<1x8x128xf32>
    %15 = vector.shape_cast %14 : vector<1x8x128xf32> to vector<8x128xf32>
    %16 = arith.addf %3, %4 : vector<16x128xf32>
    %17 = vector.shape_cast %16 : vector<16x128xf32> to vector<2x8x128xf32>
    %cst_13 = arith.constant dense<0.000000e+00> : vector<8x128xf32>
    %18 = vector.multi_reduction <add>, %17, %cst_13 [0] : vector<2x8x128xf32> to vector<8x128xf32>
    %19 = arith.addf %15, %18 : vector<8x128xf32>
    %c0_14 = arith.constant 0 : index
    %c0_15 = arith.constant 0 : index
    %c0_16 = arith.constant 0 : index
    %20 = vector.load %arg5[%c0_14, %c0_15, %c0_16] : memref<1x8x128xf32, #tpu.memory_space<vmem>>, vector<1x8x128xf32>
    %21 = vector.shape_cast %20 : vector<1x8x128xf32> to vector<8x128xf32>
    %22 = vector.shape_cast %19 : vector<8x128xf32> to vector<1x8x128xf32>
    tpu.vector_store %arg5[%c0_14, %c0_15, %c0_16], %22 {strides = array<i32>} : memref<1x8x128xf32, #tpu.memory_space<vmem>>, vector<1x8x128xf32>,
    return
  }
  func.func @transform_0(%arg0: i32, %arg1: i32) -> (i32, i32) {
    %c1_i32 = arith.constant 1 : i32
    %0 = arith.muli %arg0, %c1_i32 : i32
    %1 = arith.addi %0, %arg1 : i32
    %c0_i32 = arith.constant 0 : i32
    %c0_i32_0 = arith.constant 0 : i32
    return %1, %c0_i32 : i32, i32
  }
  func.func @transform_1(%arg0: i32, %arg1: i32) -> (i32, i32) {
    %c1_i32 = arith.constant 1 : i32
    %0 = arith.muli %arg0, %c1_i32 : i32
    %1 = arith.addi %0, %arg1 : i32
    %c0_i32 = arith.constant 0 : i32
    %c0_i32_0 = arith.constant 0 : i32
    return %1, %c0_i32 : i32, i32
  }
  func.func @transform_2(%arg0: i32, %arg1: i32) -> (i32, i32, i32) {
    %c0_i32 = arith.constant 0 : i32
    %c0_i32_0 = arith.constant 0 : i32
    %c0_i32_1 = arith.constant 0 : i32
    return %arg0, %c0_i32, %c0_i32_0 : i32, i32, i32
  }
  func.func @transform_3(%arg0: i32, %arg1: i32) -> (i32, i32, i32) {
    %c0_i32 = arith.constant 0 : i32
    %c0_i32_0 = arith.constant 0 : i32
    %c0_i32_1 = arith.constant 0 : i32
    return %arg0, %c0_i32, %c0_i32_0 : i32, i32, i32
  }
}

</mosaic_0001>

<bundles_post_ra>
// kernel: tpu_custom_call.1
= control target key start
LH: loop header
LB: loop body
LE: loop exit
PB: predicated region body
PF: predicated region fallthrough
CT: control target
= control target key end

     0   :  { %9 = vsyncpa [#allocation3], 0  ;;  %s284_s0 = inlined_call_operand.hbm [shape: f32[16,128], index: 0, kind: input, shape index: {}]   ;;  %s285_s1 = inlined_call_operand.hbm [shape: f32[16,128], index: 1, kind: input, shape index: {}]   ;;  %s286_s2 = inlined_call_operand.hbm [shape: f32[1,8,128], index: 2, kind: output, shape index: {0}]   ;;  %s287_s3 = inlined_call_operand.hbm [shape: f32[1,8,128], index: 3, kind: output, shape index: {1}]  }
   0x1   :  { %10 = vsyncpa [#allocation6], 0 }
   0x2   :  { %11 = vsyncpa [#allocation4], 0 }
   0x3   :  { %12 = vsyncpa [#allocation9], 0  ;;  %s210_s12 = smov [#allocation2]   ;;  %s114_s16 = scalar_lea.hbm %s284_s0, 256 }
   0x4   :  { %s22_s13 = sshll.u32 %s210_s12, 4  ;;  %p115_p0 = scmp.ne.s32.totalorder %s284_s0, %s114_s16  ;;  %s23_s13 = int_to_ptr.vmem [resolvable:$true] %s22_s13 }
   0x5   :  { %p118_p1 = scmp.lt.u32.totalorder %s114_s16, %s284_s0 }
   0x7   :  { %p120_p2 = pnand %p118_p1, %p115_p0 }
   0x9   :  { %123 = shalt.err (!%p120_p2)
}
   0xa   :  { %s124_s21 = scalar_lea.vmem %s23_s13, 256  ;;  %p129_p4 = scmp.lt.s32.totalorder %s23_s13, %s23_s13 }
   0xb   :  { %p125_p3 = scmp.ne.s32.totalorder %s23_s13, %s124_s21  ;;  %p130_p5 = scmp.lt.s32.totalorder %s124_s21, %s124_s21 }
   0xd   :  { %p131_p6 = por %p130_p5, %p129_p4 }
   0xf   :  { %p132_p7 = pnand %p131_p6, %p125_p3 }
  0x11   :  { %135 = shalt.err (!%p132_p7)
}
  0x12   :  { %s211_s22 = smov 128   ;;  %s212_s23 = smov 8  }
  0x13   :  { %28 = dma.hbm_to_vmem [thread:$0]  %s284_s0, 256, %s23_s13, [#allocation3], %s211_s22, %s211_s22, %s212_s23  }
  0x14   :  { %s213_s26 = smov [#allocation5]   ;;  %s136_s30 = scalar_lea.hbm %s285_s1, 256 }
  0x15   :  { %s38_s27 = sshll.u32 %s213_s26, 4  ;;  %p137_p8 = scmp.ne.s32.totalorder %s285_s1, %s136_s30  ;;  %s39_s27 = int_to_ptr.vmem [resolvable:$true] %s38_s27 }
  0x16   :  { %p140_p9 = scmp.lt.u32.totalorder %s136_s30, %s285_s1 }
  0x18   :  { %p142_p10 = pnand %p140_p9, %p137_p8 }
  0x1a   :  { %145 = shalt.err (!%p142_p10)
}
  0x1b   :  { %s146_s8 = scalar_lea.vmem %s39_s27, 256  ;;  %p151_p12 = scmp.lt.s32.totalorder %s39_s27, %s39_s27 }
  0x1c   :  { %p147_p11 = scmp.ne.s32.totalorder %s39_s27, %s146_s8  ;;  %p152_p13 = scmp.lt.s32.totalorder %s146_s8, %s146_s8 }
  0x1e   :  { %p153_p0 = por %p152_p13, %p151_p12 }
  0x20   :  { %p154_p1 = pnand %p153_p0, %p147_p11 }
  0x22   :  { %157 = shalt.err (!%p154_p1)
}
  0x23   :  { %44 = dma.hbm_to_vmem [thread:$0]  %s285_s1, 256, %s39_s27, [#allocation6], %s211_s22, %s211_s22, %s212_s23  }
  0x24   :  { %202 = dma.done.wait [#allocation3], 256  }
  0x25   :  { %203 = vsyncadd [#allocation3], 4294967040 }
  0x26   :  { %204 = dma.done.wait [#allocation6], 256  }
  0x27   :  { %205 = vsyncadd [#allocation6], 4294967040  ;;  %v61_v0 = vld [vmem:[#allocation2] sm:$0xff]  ;;  %v62_v1 = vld [vmem:[#allocation2 + $0x8] sm:$0xff]  ;;  %s214_s10 = smov [#allocation7]   ;;  %s215_s12 = smov [#allocation8]  }
  0x28   :  { %v63_v2 = vld [vmem:[#allocation5] sm:$0xff]  ;;  %v64_v3 = vld [vmem:[#allocation5 + $0x8] sm:$0xff]  ;;  %s83_s11 = sshll.u32 %s214_s10, 4  ;;  %s93_s13 = sshll.u32 %s215_s12, 4  ;;  %s84_s11 = int_to_ptr.vmem [resolvable:$true] %s83_s11  ;;  %s94_s13 = int_to_ptr.vmem [resolvable:$true] %s93_s13 }
  0x29   :  { %v66_v4 = vmul.f32 %v63_v2, %v61_v0  ;;  %v72_v5 = vadd.f32 %v63_v2, %v61_v0  ;;  %v67_v6 = vmul.f32 %v64_v3, %v62_v1  ;;  %v73_v7 = vadd.f32 %v64_v3, %v62_v1  ;;  %s158_s1 = scalar_lea.vmem %s84_s11, 128  ;;  %p163_p3 = scmp.lt.s32.totalorder %s84_s11, %s84_s11 }
  0x2a   :  { %p159_p2 = scmp.ne.s32.totalorder %s84_s11, %s158_s1  ;;  %p164_p4 = scmp.lt.s32.totalorder %s158_s1, %s158_s1 }
  0x2b   :  { %v68_v8 = vadd.f32 %v67_v6, %v66_v4  ;;  %v74_v9 = vadd.f32 %v73_v7, %v72_v5 }
  0x2c   :  { %p165_p5 = por %p164_p4, %p163_p3 }
  0x2d   :  { %70 = vst [vmem:[#allocation7] sm:$0xff] %v68_v8  ;;  %76 = vst [vmem:[#allocation8] sm:$0xff] %v74_v9 }
  0x2e   :  { %p166_p6 = pnand %p165_p5, %p159_p2 }
  0x30   :  { %169 = shalt.err (!%p166_p6)
}
  0x31   :  { %s170_s16 = scalar_lea.hbm %s286_s2, 128 }
  0x32   :  { %p171_p7 = scmp.ne.s32.totalorder %s286_s2, %s170_s16  ;;  %p174_p8 = scmp.lt.u32.totalorder %s170_s16, %s286_s2 }
  0x34   :  { %p176_p9 = pnand %p174_p8, %p171_p7 }
  0x36   :  { %179 = shalt.err (!%p176_p9)
}
  0x37   :  { %86 = dma.vmem_to_hbm [thread:$0]  %s84_s11, 128, %s286_s2, [#allocation4]  }
  0x38   :  { %s180_s23 = scalar_lea.vmem %s94_s13, 128  ;;  %p185_p11 = scmp.lt.s32.totalorder %s94_s13, %s94_s13 }
  0x39   :  { %p181_p10 = scmp.ne.s32.totalorder %s94_s13, %s180_s23  ;;  %p186_p12 = scmp.lt.s32.totalorder %s180_s23, %s180_s23 }
  0x3b   :  { %p187_p13 = por %p186_p12, %p185_p11 }
  0x3d   :  { %p188_p0 = pnand %p187_p13, %p181_p10 }
  0x3f   :  { %191 = shalt.err (!%p188_p0)
}
  0x40   :  { %s192_s26 = scalar_lea.hbm %s287_s3, 128 }
  0x41   :  { %p193_p1 = scmp.ne.s32.totalorder %s287_s3, %s192_s26  ;;  %p196_p2 = scmp.lt.u32.totalorder %s192_s26, %s287_s3 }
  0x43   :  { %p198_p3 = pnand %p196_p2, %p193_p1 }
  0x45   :  { %201 = shalt.err (!%p198_p3)
}
  0x46   :  { %96 = dma.vmem_to_hbm [thread:$0]  %s94_s13, 128, %s287_s3, [#allocation9]  }
  0x47   :  { %206 = dma.done.wait [#allocation4], 128  }
  0x48   :  { %207 = vsyncadd [#allocation4], 4294967168 }
  0x49   :  { %208 = dma.done.wait [#allocation9], 128  }
  0x4a   :  { %209 = vsyncadd [#allocation9], 4294967168 }
  0x4b   :  { %103 = vsyncpa [#allocation3], 1 }
  0x4c   :  { %104 = vsyncpa [#allocation6], 1 }
  0x4d   :  { %105 = vsyncpa [#allocation4], 1 }
  0x4e   :  { %106 = vsyncpa [#allocation9], 1 }

</bundles_post_ra>
